<compile_context>
chip_gen: v7x
topology: tpu7x:2x2x1
jax: 0.10.0
libtpu: 0.0.40
codegen_flags: <defaults>
</compile_context>

<pallas_src>
import math

import jax
import jax.numpy as jnp
from jax.experimental import pallas as pl
from jax.experimental.pallas import tpu as pltpu

_INV_LN2 = 1.0 / math.log(2.0)

# Rough count of full-block f32 temporaries the kernel keeps live in VMEM
# (transposed copy, shifted, exp, product) -- used only for VMEM budgeting.
_KERNEL_TEMPS = 5


def _entropy_softmax_kernel(x_ref, o_ref):
    # x_ref: (TILE_N, C) block in the array's natural [N, C] layout.
    # o_ref: (1, TILE_N) per-sample entropy (lane-dense output block).
    #
    # One XLU transpose puts samples on lanes / classes on sublanes so the
    # exp/mul/reduce work is lane-dense (with C ~ 10-100 classes, reducing
    # over lanes directly would leave most of the 128 lanes idle and make
    # the kernel VPU/EUP-bound). The XLU slot has slack in this HBM-bound
    # kernel. (pltpu.einshape("nc->cn", ...) is an alternative swizzle.)
    x = jnp.transpose(x_ref[...].astype(jnp.float32))   # (C, TILE_N)
    m = jnp.max(x, axis=0, keepdims=True)                # (1, T) stable shift
    shifted = x - m
    e = jnp.exp(shifted)                                 # EUP
    s = jnp.sum(e, axis=0, keepdims=True)                # (1, T)
    w = jnp.sum(e * shifted, axis=0, keepdims=True)      # (1, T)
    # entropy = -sum(p * log p) = log(s) - sum(e * (x - m)) / s
    ent = jnp.log(s) - w * pl.reciprocal(s, approx=True)
    o_ref[...] = ent.astype(o_ref.dtype)


def _entropy_plogp_kernel(x_ref, o_ref):
    # applySoftMax=False path: x already holds probabilities; entropy in bits.
    # Matches torch semantics (exact zeros -> 0 * log(0) = NaN, not guarded).
    x = jnp.transpose(x_ref[...].astype(jnp.float32))    # (C, TILE_N)
    ent = -jnp.sum(x * jnp.log(x), axis=0, keepdims=True) * _INV_LN2
    o_ref[...] = ent.astype(o_ref.dtype)


def _round_up(x, m):
    return ((x + m - 1) // m) * m


def _vmem_capacity_bytes():
    """Per-core physical VMEM; fall back to the smallest generation (v7x)."""
    try:
        return int(pltpu.get_tpu_info().vmem_capacity_bytes)
    except Exception:
        return 64 * 1024 * 1024


def _vmem_bytes_per_sample(c, itemsize, buffers):
    """Resident VMEM bytes per sample column: pipelined input + f32 temps."""
    return buffers * c * itemsize + _KERNEL_TEMPS * c * 4


def _choose_tile_n(n, c, itemsize, *, buffers=2, target_blocks=8,
                   min_blocks=4, block_floor_bytes=1 << 20):
    """Pick the sample (lane) tile per grid step.

    Goals (perf review):
      * never collapse to a single grid step for non-tiny N, so the input DMA
        pipelines against compute and v7x can shard the grid across both TCs;
      * keep per-block HBM traffic >= ~1 MiB so the ~0.35 us per-step overhead
        stays well under 20% at every generation's HBM bandwidth (v5e..v7x);
      * keep the pipelined input blocks (+ in-kernel f32 temporaries) inside
        a conservative VMEM budget (half the per-core physical capacity).
    """
    if n < 2 * 128:
        return n  # tiny problem: one whole-extent block is always legal.
    hbm_bytes_per_sample = max(1, c * itemsize)
    # (a) aim for ~target_blocks grid steps.
    tile = _round_up(pl.cdiv(n, target_blocks), 128)
    # (b) ...but keep each block above the per-step-overhead floor, as long as
    #     that still leaves at least min_blocks blocks.
    floor_tile = _round_up(pl.cdiv(block_floor_bytes, hbm_bytes_per_sample), 128)
    min_blocks_tile = _round_up(pl.cdiv(n, min_blocks), 128)
    tile = max(tile, min(floor_tile, min_blocks_tile))
    # (c) ...and inside the VMEM budget.
    budget = _vmem_capacity_bytes() // 2
    vmem_tile = (budget // _vmem_bytes_per_sample(c, itemsize, buffers)) // 128 * 128
    tile = min(tile, max(128, vmem_tile))
    return max(128, tile)


def entropy_loss(x, apply_softmax=True, tile_n=None, buffers=2):
    """Pallas TPU implementation of EntropyLoss.forward.

    x: [N, C] array (logits if apply_softmax else probabilities).
    Returns [N] float32 entropies.
    """
    n, c = x.shape
    itemsize = x.dtype.itemsize
    if tile_n is None:
        tile_n = _choose_tile_n(n, c, itemsize, buffers=buffers)
    num_blocks = pl.cdiv(n, tile_n)

    # VMEM footprint of the pipelined input blocks + in-kernel temporaries.
    cap = _vmem_capacity_bytes()
    needed = tile_n * _vmem_bytes_per_sample(c, itemsize, buffers) + 2 * tile_n * 4
    if needed > cap - (16 << 20):
        # TODO(synk): for vocab-scale C, add an inner "arbitrary" grid axis
        # over C with online max/sum/weighted-sum accumulators (flash-softmax
        # style) instead of one (tile_n, C) block.
        raise NotImplementedError(
            f"C={c} is too large for a single (tile_n={tile_n}, C) VMEM block "
            f"on this TPU ({cap >> 20} MiB VMEM per core)")
    vmem_limit = int(min(cap - (8 << 20), max(needed + (8 << 20), 32 << 20)))

    kernel = _entropy_softmax_kernel if apply_softmax else _entropy_plogp_kernel
    cost = pl.CostEstimate(
        flops=6 * n * c,
        transcendentals=n * c + (2 * n if apply_softmax else 0),
        bytes_accessed=n * c * itemsize + n * 4,
    )

    in_spec_kwargs = {}
    if buffers != 2:
        # Deeper input pipelining if profiling shows exposed DMA (e.g. v7x).
        in_spec_kwargs["pipeline_mode"] = pl.Buffered(buffers)

    out = pl.pallas_call(
        kernel,
        out_shape=jax.ShapeDtypeStruct((1, n), jnp.float32),
        grid=(num_blocks,),
        in_specs=[pl.BlockSpec((tile_n, c), lambda i: (i, 0), **in_spec_kwargs)],
        out_specs=pl.BlockSpec((1, tile_n), lambda i: (0, i)),
        compiler_params=pltpu.CompilerParams(
            dimension_semantics=("parallel",),
            vmem_limit_bytes=vmem_limit,
        ),
        cost_estimate=cost,
    )(x)
    return out[0]


if __name__ == "__main__":
    key = jax.random.PRNGKey(0)
    N, C = 8, 16  # batch of 8 samples, 16 classes
    x = jax.random.normal(key, (N, C), dtype=jnp.float32)

    # Main path: applySoftMax=True
    ent = jax.block_until_ready(entropy_loss(x, apply_softmax=True))
    ref = -jnp.sum(jax.nn.softmax(x, axis=1) * jax.nn.log_softmax(x, axis=1), axis=1)
    assert ent.shape == (N,)
    assert jnp.allclose(ent, ref, atol=5e-3, rtol=5e-3), (ent, ref)

    # Secondary path: applySoftMax=False (input must be probabilities)
    probs = jax.nn.softmax(jax.random.normal(jax.random.PRNGKey(1), (N, C)), axis=1)
    ent2 = jax.block_until_ready(entropy_loss(probs, apply_softmax=False))
    ref2 = -jnp.sum(probs * (jnp.log(probs) / jnp.log(2.0)), axis=1)
    assert jnp.allclose(ent2, ref2, atol=1e-5, rtol=1e-5), (ent2, ref2)

    # Multi-block path (3 lane blocks incl. a masked partial last block).
    N2, C2 = 300, 10
    x2 = jax.random.normal(jax.random.PRNGKey(2), (N2, C2), dtype=jnp.float32)
    ent3 = jax.block_until_ready(entropy_loss(x2, apply_softmax=True, tile_n=128))
    ref3 = -jnp.sum(jax.nn.softmax(x2, axis=1) * jax.nn.log_softmax(x2, axis=1), axis=1)
    assert ent3.shape == (N2,)
    assert jnp.allclose(ent3, ref3, atol=5e-3, rtol=5e-3), (ent3, ref3)

    print("KERNEL_OK")
</pallas_src>

<mosaic_0001>
module attributes {stable_mosaic.version = 11 : i64} {
  func.func @_entropy_softmax_kernel(%arg0: i32, %arg1: memref<8x16xf32, #tpu.memory_space<vmem>>, %arg2: memref<1x8xf32, #tpu.memory_space<vmem>>) attributes {dimension_semantics = [#tpu.dimension_semantics<parallel>], iteration_bounds = array<i64: 1>, scalar_prefetch = 0 : i64, scratch_operands = 0 : i64, tpu.core_type = #tpu.core_type<tc>, window_params = [{transform_indices = @transform_0, window_bounds = array<i64: 8, 16>}, {transform_indices = @transform_1, window_bounds = array<i64: 1, 8>}]} {
    %c0 = arith.constant 0 : index
    %c0_0 = arith.constant 0 : index
    %0 = vector.load %arg1[%c0, %c0_0] : memref<8x16xf32, #tpu.memory_space<vmem>>, vector<8x16xf32>
    %1 = tpu.transpose %0, [1, 0] : vector<8x16xf32> -> vector<16x8xf32>
    %cst = arith.constant dense<0xFF800000> : vector<8xf32>
    %2 = vector.multi_reduction <maximumf>, %1, %cst [0] : vector<16x8xf32> to vector<8xf32>
    %3 = vector.shape_cast %2 : vector<8xf32> to vector<1x8xf32>
    %4 = vector.broadcast %3 : vector<1x8xf32> to vector<16x8xf32>
    %5 = arith.subf %1, %4 : vector<16x8xf32>
    %6 = math.exp %5 : vector<16x8xf32>
    %cst_1 = arith.constant dense<0.000000e+00> : vector<8xf32>
    %7 = vector.multi_reduction <add>, %6, %cst_1 [0] : vector<16x8xf32> to vector<8xf32>
    %8 = vector.shape_cast %7 : vector<8xf32> to vector<1x8xf32>
    %9 = arith.mulf %6, %5 : vector<16x8xf32>
    %cst_2 = arith.constant dense<0.000000e+00> : vector<8xf32>
    %10 = vector.multi_reduction <add>, %9, %cst_2 [0] : vector<16x8xf32> to vector<8xf32>
    %11 = vector.shape_cast %10 : vector<8xf32> to vector<1x8xf32>
    %12 = math.log %8 : vector<1x8xf32>
    %13 = tpu.reciprocal %8 {approx = true} : vector<1x8xf32> -> vector<1x8xf32>
    %14 = arith.mulf %11, %13 : vector<1x8xf32>
    %15 = arith.subf %12, %14 : vector<1x8xf32>
    %c0_3 = arith.constant 0 : index
    %c0_4 = arith.constant 0 : index
    %16 = vector.load %arg2[%c0_3, %c0_4] : memref<1x8xf32, #tpu.memory_space<vmem>>, vector<1x8xf32>
    tpu.vector_store %arg2[%c0_3, %c0_4], %15 {strides = array<i32>} : memref<1x8xf32, #tpu.memory_space<vmem>>, vector<1x8xf32>,
    return
  }
  func.func @transform_0(%arg0: i32) -> (i32, i32) {
    %c0_i32 = arith.constant 0 : i32
    %c0_i32_0 = arith.constant 0 : i32
    return %arg0, %c0_i32 : i32, i32
  }
  func.func @transform_1(%arg0: i32) -> (i32, i32) {
    %c0_i32 = arith.constant 0 : i32
    %c0_i32_0 = arith.constant 0 : i32
    return %c0_i32, %arg0 : i32, i32
  }
}

</mosaic_0001>

<bundles_post_ra>
// kernel: tpu_custom_call.1
= control target key start
LH: loop header
LB: loop body
LE: loop exit
PB: predicated region body
PF: predicated region fallthrough
CT: control target
= control target key end

     0   :  { %6 = vsyncpa [#allocation3], 0  ;;  %s213_s0 = inlined_call_operand.hbm [shape: f32[8,16], index: 0, kind: input, shape index: {}]   ;;  %s214_s1 = inlined_call_operand.hbm [shape: f32[1,8], index: 1, kind: output, shape index: {}]  }
   0x1   :  { %7 = vsyncpa [#allocation4], 0  ;;  %s171_s6 = smov [#allocation2]   ;;  %s123_s10 = scalar_lea.hbm %s213_s0, 128 }
   0x2   :  { %s14_s7 = sshll.u32 %s171_s6, 4  ;;  %p124_p0 = scmp.ne.s32.totalorder %s213_s0, %s123_s10  ;;  %s15_s7 = int_to_ptr.vmem [resolvable:$true] %s14_s7 }
   0x3   :  { %p127_p1 = scmp.lt.u32.totalorder %s123_s10, %s213_s0 }
   0x5   :  { %p129_p2 = pnand %p127_p1, %p124_p0 }
   0x7   :  { %132 = shalt.err (!%p129_p2)
}
   0x8   :  { %s133_s15 = scalar_lea.vmem %s15_s7, 128  ;;  %p138_p4 = scmp.lt.s32.totalorder %s15_s7, %s15_s7 }
   0x9   :  { %p134_p3 = scmp.ne.s32.totalorder %s15_s7, %s133_s15  ;;  %p139_p5 = scmp.lt.s32.totalorder %s133_s15, %s133_s15 }
   0xb   :  { %p140_p6 = por %p139_p5, %p138_p4 }
   0xd   :  { %p141_p7 = pnand %p140_p6, %p134_p3 }
   0xf   :  { %144 = shalt.err (!%p141_p7)
}
  0x10   :  { %17 = dma.hbm_to_vmem [thread:$0]  %s213_s0, 128, %s15_s7, [#allocation3]  }
  0x11   :  { %167 = dma.done.wait [#allocation3], 128  }
  0x12   :  { %168 = vsyncadd [#allocation3], 4294967168  ;;  %v21_v0 = vld [vmem:[#allocation2] sm:$0xff]  ;;  %vm54_vm0 = vcmask 64512   ;;  %s172_s0 = smov [#allocation5]   ;;  %vm95_vm1 = vcmask 57344  }
  0x13   :  { %22 = vxpose.xlu0.b32.start.end [1/1] (short) (narrow) %v21_v0, 16  ;;  %s103_s18 = sshll.u32 %s172_s0, 4  ;;  %s104_s18 = int_to_ptr.vmem [resolvable:$true] %s103_s18 }
  0x14   :  { %s145_s19 = scalar_lea.vmem %s104_s18, 16  ;;  %s149_s20 = scalar_lea.vmem %s104_s18, 32 }
  0x15   :  { %p146_p8 = scmp.ne.s32.totalorder %s104_s18, %s145_s19  ;;  %p150_p9 = scmp.lt.s32.totalorder %s104_s18, %s104_s18 }
  0x16   :  { %p151_p10 = scmp.lt.s32.totalorder %s149_s20, %s145_s19 }
  0x18   :  { %p152_p11 = por %p151_p10, %p150_p9 }
  0x1a   :  { %p153_p12 = pnand %p152_p11, %p146_p8 }
  0x93   :  { %v38_v1 = vpop.trf.xlu0 }
  0x94   :  { %v55_v3 = vsel %vm54_vm0, %v38_v1, -inf }
  0x97   :  { %v39_v2 = vpop.trf.xlu0 }
  0x98   :  { %v56_v4 = vsel %vm54_vm0, %v39_v2, -inf }
  0x99   :  { %v57_v5 = vmax.f32 %v55_v3, %v56_v4 }
  0x9b   :  { %v58_v6 = vrot.slane %v57_v5, 4 }
  0x9d   :  { %v59_v7 = vmax.f32 %v57_v5, %v58_v6 }
  0x9f   :  { %v60_v8 = vrot.slane %v59_v7, 2 }
  0xa1   :  { %v61_v9 = vmax.f32 %v59_v7, %v60_v8 }
  0xa3   :  { %v62_v10 = vrot.slane %v61_v9, 1 }
  0xa5   :  { %v63_v11 = vmax.f32 %v61_v9, %v62_v10 }
  0xa7   :  { %v64_v12 = vsub.f32 %v38_v1, %v63_v11  ;;  %v65_v13 = vsub.f32 %v39_v2, %v63_v11 }
  0xa9   :  { %v66_v14 = vmul.f32 1.442695, %v64_v12  ;;  %v68_v15 = vmul.f32 1.442695, %v65_v13 }
  0xab   :  { %115 = vpow2.f32 %v66_v14 }
  0xac   :  { %117 = vpow2.f32 %v68_v15 }
  0xb5   :  { %v116_v16 = vpop.eup %115 }
  0xb6   :  { %v118_v17 = vpop.eup %117  ;;  %v70_v18 = vsel %vm54_vm0, %v116_v16, 0.0  ;;  %v79_v19 = vmul.f32 %v116_v16, %v64_v12 }
  0xb7   :  { %v71_v20 = vsel %vm54_vm0, %v118_v17, 0.0  ;;  %v80_v21 = vmul.f32 %v118_v17, %v65_v13 }
  0xb8   :  { %v72_v22 = vadd.f32 %v71_v20, %v70_v18  ;;  %v81_v23 = vsel %vm54_vm0, %v79_v19, 0.0 }
  0xb9   :  { %v82_v24 = vsel %vm54_vm0, %v80_v21, 0.0 }
  0xba   :  { %v73_v25 = vrot.slane %v72_v22, 4  ;;  %v83_v26 = vadd.f32 %v82_v24, %v81_v23 }
  0xbc   :  { %v84_v27 = vrot.slane %v83_v26, 4  ;;  %v74_v28 = vadd.f32 %v73_v25, %v72_v22 }
  0xbe   :  { %v75_v29 = vrot.slane %v74_v28, 2  ;;  %v85_v30 = vadd.f32 %v84_v27, %v83_v26 }
  0xc0   :  { %v76_v31 = vadd.f32 %v75_v29, %v74_v28  ;;  %v86_v33 = vrot.slane %v85_v30, 2 }
  0xc2   :  { %v77_v32 = vrot.slane %v76_v31, 1  ;;  %v87_v35 = vadd.f32 %v86_v33, %v85_v30 }
  0xc4   :  { %v78_v34 = vadd.f32 %v77_v32, %v76_v31  ;;  %v88_v36 = vrot.slane %v87_v35, 1 }
  0xc6   :  { %119 = vlog2.f32 %v78_v34  ;;  %v89_v38 = vadd.f32 %v88_v36, %v87_v35 }
  0xc7   :  { %121 = vrcp.f32 %v78_v34 }
  0xd0   :  { %v120_v37 = vpop.eup %119 }
  0xd1   :  { %v122_v39 = vpop.eup %121  ;;  %v91_v40 = vmul.f32 0.6931472, %v120_v37 }
  0xd2   :  { %v93_v41 = vmul.f32 %v122_v39, %v89_v38 }
  0xd4   :  { %v94_v42 = vsub.f32 %v91_v40, %v93_v41 }
  0xd6   :  { %96 = vst.msk [vmem:[#allocation5] sm:$0x1] %vm95_vm1, %v94_v42 }
  0xd7   :  { %156 = shalt.err (!%p153_p12)
}
  0xd8   :  { %s157_s23 = scalar_lea.hbm %s214_s1, 16 }
  0xd9   :  { %p158_p13 = scmp.ne.s32.totalorder %s214_s1, %s157_s23  ;;  %p161_p0 = scmp.lt.u32.totalorder %s157_s23, %s214_s1 }
  0xdb   :  { %p163_p1 = pnand %p161_p0, %p158_p13 }
  0xdd   :  { %166 = shalt.err (!%p163_p1)
}
  0xde   :  { %106 = dma.vmem_to_hbm [thread:$0]  %s104_s18, 16, %s214_s1, [#allocation4]  }
  0xdf   :  { %169 = dma.done.wait [#allocation4], 16  }
  0xe0   :  { %170 = vsyncadd [#allocation4], 4294967280 }
  0xe1   :  { %110 = vsyncpa [#allocation3], 1 }
  0xe2   :  { %111 = vsyncpa [#allocation4], 1 }

</bundles_post_ra>
